<compile_context>
chip_gen: v7x
topology: tpu7x:2x2x1
jax: 0.10.0
libtpu: 0.0.40
codegen_flags: <defaults>
</compile_context>

<pallas_src>
import math

import jax
import jax.numpy as jnp
from jax.experimental import pallas as pl
from jax.experimental.pallas import tpu as pltpu


STATE_DIM = 4
ACTION_DIM = 4
IN_DIM = STATE_DIM + ACTION_DIM        # 8
HIDDEN = 100
HIDDEN_PAD = 128                       # hidden padded to one full lane group


def _round_up(v, m):
    return ((v + m - 1) // m) * m


def _residual_mlp_kernel(x_ref, w1_ref, b1_ref, w2_ref, b2_ref, w3_ref, b3_ref,
                         o_ref):
    """One batch-column tile, transposed (batch-on-lanes) layout.

    x_ref : (IN_DIM, TB)   f32, rows 0:4 = state^T, rows 4:8 = action^T
    w1_ref: (128, 8)  bf16   b1_ref: (128, 1) f32
    w2_ref: (128, 128) bf16  b2_ref: (128, 1) f32
    w3_ref: (4, 128)  bf16   b3_ref: (4, 1)  f32
    o_ref : (STATE_DIM, TB) f32 = state^T + delta^T
    """
    x = x_ref[...]                                    # f32, kept for residual
    xb = x.astype(jnp.bfloat16)

    # layer 1: (128, 8) @ (8, TB) + b1, ReLU   (f32 accumulate, f32 VPU ops)
    h = jnp.dot(w1_ref[...], xb, preferred_element_type=jnp.float32) + b1_ref[...]
    h = jnp.maximum(h, 0.0)

    # layer 2: (128, 128) @ (128, TB) + b2, ReLU
    h = jnp.dot(w2_ref[...], h.astype(jnp.bfloat16),
                preferred_element_type=jnp.float32) + b2_ref[...]
    h = jnp.maximum(h, 0.0)

    # layer 3: (4, 128) @ (128, TB) + b3  -> delta^T   (M=4 -> ~1 push / chunk)
    delta = jnp.dot(w3_ref[...], h.astype(jnp.bfloat16),
                    preferred_element_type=jnp.float32) + b3_ref[...]

    # residual: state^T is the first STATE_DIM rows of the streamed block
    o_ref[...] = x[:STATE_DIM, :] + delta


def prepare_params(params):
    """One-time parameter prep (hoisted out of the forward path).

    PyTorch nn.Linear weights are (out, in); in the transposed layout the kernel
    computes W @ x^T, so weights are used as-is, zero-padded 100 -> 128 and cast
    to bf16.  Biases become (out_pad, 1) f32 columns (lane-broadcast in-kernel).
    Padding is numerically inert (padded biases are 0, padded rows stay 0
    through ReLU and multiply zero columns of the next layer).
    """
    w1, b1, w2, b2, w3, b3 = params
    f32 = jnp.float32
    w1p = (jnp.zeros((HIDDEN_PAD, IN_DIM), f32)
           .at[:HIDDEN, :].set(w1.astype(f32))).astype(jnp.bfloat16)
    b1p = jnp.zeros((HIDDEN_PAD, 1), f32).at[:HIDDEN, 0].set(b1.astype(f32))
    w2p = (jnp.zeros((HIDDEN_PAD, HIDDEN_PAD), f32)
           .at[:HIDDEN, :HIDDEN].set(w2.astype(f32))).astype(jnp.bfloat16)
    b2p = jnp.zeros((HIDDEN_PAD, 1), f32).at[:HIDDEN, 0].set(b2.astype(f32))
    w3p = (jnp.zeros((STATE_DIM, HIDDEN_PAD), f32)
           .at[:, :HIDDEN].set(w3.astype(f32))).astype(jnp.bfloat16)
    b3p = b3.reshape(STATE_DIM, 1).astype(f32)
    return (w1p, b1p, w2p, b2p, w3p, b3p)


def residual_dynamics_forward(state, action, prepared_params, *,
                              block_cols=2048, target_steps=8):
    """state: (..., STATE_DIM), action: (..., ACTION_DIM) -> (..., STATE_DIM).

    prepared_params: output of prepare_params(params).
    """
    w1p, b1p, w2p, b2p, w3p, b3p = prepared_params
    lead_shape = state.shape[:-1]
    n = math.prod(lead_shape) if lead_shape else 1

    s2 = state.reshape(n, STATE_DIM).astype(jnp.float32)
    a2 = action.reshape(n, ACTION_DIM).astype(jnp.float32)
    # Layout plumbing: one concat+transpose builds the batch-on-lanes input.
    xT = jnp.concatenate([s2, a2], axis=-1).T                 # (IN_DIM, n)

    # lane tile: multiple of 128, ~target_steps grid steps, capped by block_cols
    tb = _round_up(max(1, pl.cdiv(n, target_steps)), 128)
    tb = max(128, min(_round_up(block_cols, 128), tb))
    n_pad = _round_up(n, tb)
    if n_pad != n:
        xT = jnp.pad(xT, ((0, 0), (0, n_pad - n)))

    grid = (n_pad // tb,)

    # advisory cost estimate (useful, unpadded work)
    flops = 2 * n * (IN_DIM * HIDDEN + HIDDEN * HIDDEN + HIDDEN * STATE_DIM)
    weight_bytes = 2 * (w1p.size + w2p.size + w3p.size) \
        + 4 * (b1p.size + b2p.size + b3p.size)
    bytes_accessed = 4 * n * IN_DIM + 4 * n * STATE_DIM + weight_bytes

    outT = pl.pallas_call(
        _residual_mlp_kernel,
        out_shape=jax.ShapeDtypeStruct((STATE_DIM, n_pad), jnp.float32),
        grid=grid,
        in_specs=[
            # streamed per batch-column tile (lane-dense)
            pl.BlockSpec((IN_DIM, tb), lambda i: (0, i)),
            # weights / biases: constant index_map -> DMA'd once, VMEM-resident
            pl.BlockSpec((HIDDEN_PAD, IN_DIM), lambda i: (0, 0)),
            pl.BlockSpec((HIDDEN_PAD, 1), lambda i: (0, 0)),
            pl.BlockSpec((HIDDEN_PAD, HIDDEN_PAD), lambda i: (0, 0)),
            pl.BlockSpec((HIDDEN_PAD, 1), lambda i: (0, 0)),
            pl.BlockSpec((STATE_DIM, HIDDEN_PAD), lambda i: (0, 0)),
            pl.BlockSpec((STATE_DIM, 1), lambda i: (0, 0)),
        ],
        out_specs=pl.BlockSpec((STATE_DIM, tb), lambda i: (0, i)),
        compiler_params=pltpu.CompilerParams(
            dimension_semantics=("parallel",)),       # megacore sharding on v7x
        cost_estimate=pl.CostEstimate(flops=flops, transcendentals=0,
                                      bytes_accessed=bytes_accessed),
    )(xT, w1p, b1p, w2p, b2p, w3p, b3p)

    out = outT[:, :n].T                               # back to row-major (n, 4)
    return out.reshape(*lead_shape, STATE_DIM)


def init_params(key):
    """Deterministic init matching nn.Linear shapes: weight (out, in), bias (out,)."""
    k1, k2, k3, k4, k5, k6 = jax.random.split(key, 6)
    in1 = STATE_DIM + ACTION_DIM
    scale1 = 1.0 / jnp.sqrt(in1)
    scale2 = 1.0 / jnp.sqrt(HIDDEN)
    w1 = jax.random.uniform(k1, (HIDDEN, in1), jnp.float32, -scale1, scale1)
    b1 = jax.random.uniform(k2, (HIDDEN,), jnp.float32, -scale1, scale1)
    w2 = jax.random.uniform(k3, (HIDDEN, HIDDEN), jnp.float32, -scale2, scale2)
    b2 = jax.random.uniform(k4, (HIDDEN,), jnp.float32, -scale2, scale2)
    w3 = jax.random.uniform(k5, (STATE_DIM, HIDDEN), jnp.float32, -scale2, scale2)
    b3 = jax.random.uniform(k6, (STATE_DIM,), jnp.float32, -scale2, scale2)
    return (w1, b1, w2, b2, w3, b3)


def reference_forward(state, action, params):
    """Pure-JAX f32 reference replicating the PyTorch forward exactly."""
    w1, b1, w2, b2, w3, b3 = params
    inp = jnp.concatenate([state, action], axis=-1)
    h = jnp.maximum(inp @ w1.T + b1, 0.0)
    h = jnp.maximum(h @ w2.T + b2, 0.0)
    delta = h @ w3.T + b3
    return state + delta


if __name__ == "__main__":
    key = jax.random.PRNGKey(0)
    kp, ks, ka, ks2, ka2 = jax.random.split(key, 5)

    params = init_params(kp)
    prepared = prepare_params(params)      # one-time weight prep (hoisted)

    # small example with a leading batch structure (..., dim) -> (2, 4, dim)
    state = jax.random.normal(ks, (2, 4, STATE_DIM), dtype=jnp.float32)
    action = jax.random.normal(ka, (2, 4, ACTION_DIM), dtype=jnp.float32)

    out = residual_dynamics_forward(state, action, prepared)
    out = jax.block_until_ready(out)
    ref = reference_forward(state, action, params)
    assert out.shape == (2, 4, STATE_DIM)
    # bf16 hidden matmuls (f32 accumulation) -> ~1e-3-level deviation vs f32 ref
    assert jnp.allclose(out, ref, atol=5e-2, rtol=5e-2), "mismatch vs reference (small)"

    # second check exercising the multi-grid-step + ragged-padding path
    state2 = jax.random.normal(ks2, (3, 700, STATE_DIM), dtype=jnp.float32)
    action2 = jax.random.normal(ka2, (3, 700, ACTION_DIM), dtype=jnp.float32)
    out2 = residual_dynamics_forward(state2, action2, prepared, block_cols=512)
    out2 = jax.block_until_ready(out2)
    ref2 = reference_forward(state2, action2, params)
    assert out2.shape == (3, 700, STATE_DIM)
    assert jnp.allclose(out2, ref2, atol=5e-2, rtol=5e-2), "mismatch vs reference (tiled)"

    print("KERNEL_OK")
</pallas_src>

<mosaic_0001>
module attributes {stable_mosaic.version = 11 : i64} {
  func.func @_residual_mlp_kernel(%arg0: i32, %arg1: memref<8x128xf32, #tpu.memory_space<vmem>>, %arg2: memref<128x8xbf16, #tpu.memory_space<vmem>>, %arg3: memref<128x1xf32, #tpu.memory_space<vmem>>, %arg4: memref<128x128xbf16, #tpu.memory_space<vmem>>, %arg5: memref<128x1xf32, #tpu.memory_space<vmem>>, %arg6: memref<4x128xbf16, #tpu.memory_space<vmem>>, %arg7: memref<4x1xf32, #tpu.memory_space<vmem>>, %arg8: memref<4x128xf32, #tpu.memory_space<vmem>>) attributes {dimension_semantics = [#tpu.dimension_semantics<parallel>], iteration_bounds = array<i64: 1>, scalar_prefetch = 0 : i64, scratch_operands = 0 : i64, tpu.core_type = #tpu.core_type<tc>, window_params = [{transform_indices = @transform_0, window_bounds = array<i64: 8, 128>}, {pipeline_mode = #tpu.pipeline_mode<synchronous>, transform_indices = @transform_1, window_bounds = array<i64: 128, 8>}, {pipeline_mode = #tpu.pipeline_mode<synchronous>, transform_indices = @transform_2, window_bounds = array<i64: 128, 1>}, {pipeline_mode = #tpu.pipeline_mode<synchronous>, transform_indices = @transform_3, window_bounds = array<i64: 128, 128>}, {pipeline_mode = #tpu.pipeline_mode<synchronous>, transform_indices = @transform_4, window_bounds = array<i64: 128, 1>}, {pipeline_mode = #tpu.pipeline_mode<synchronous>, transform_indices = @transform_5, window_bounds = array<i64: 4, 128>}, {pipeline_mode = #tpu.pipeline_mode<synchronous>, transform_indices = @transform_6, window_bounds = array<i64: 4, 1>}, {transform_indices = @transform_7, window_bounds = array<i64: 4, 128>}]} {
    %c0 = arith.constant 0 : index
    %c0_0 = arith.constant 0 : index
    %0 = vector.load %arg1[%c0, %c0_0] : memref<8x128xf32, #tpu.memory_space<vmem>>, vector<8x128xf32>
    %1 = arith.truncf %0 : vector<8x128xf32> to vector<8x128xbf16>
    %c0_1 = arith.constant 0 : index
    %c0_2 = arith.constant 0 : index
    %2 = vector.load %arg2[%c0_1, %c0_2] : memref<128x8xbf16, #tpu.memory_space<vmem>>, vector<128x8xbf16>
    %cst = arith.constant dense<0.000000e+00> : vector<128x128xf32>
    %3 = tpu.matmul %2, %1, %cst {dimension_numbers = #tpu.dot_dimension_numbers<[1], [0], [0], [1], [0, 0, 1, 1], [], []>} : vector<128x8xbf16>, vector<8x128xbf16>, vector<128x128xf32> -> vector<128x128xf32>
    %c0_3 = arith.constant 0 : index
    %c0_4 = arith.constant 0 : index
    %4 = vector.load %arg3[%c0_3, %c0_4] : memref<128x1xf32, #tpu.memory_space<vmem>>, vector<128x1xf32>
    %5 = vector.broadcast %4 : vector<128x1xf32> to vector<128x128xf32>
    %6 = arith.addf %3, %5 : vector<128x128xf32>
    %cst_5 = arith.constant 0.000000e+00 : f32
    %7 = vector.broadcast %cst_5 : f32 to vector<128x128xf32>
    %8 = arith.maximumf %6, %7 : vector<128x128xf32>
    %c0_6 = arith.constant 0 : index
    %c0_7 = arith.constant 0 : index
    %9 = vector.load %arg4[%c0_6, %c0_7] : memref<128x128xbf16, #tpu.memory_space<vmem>>, vector<128x128xbf16>
    %10 = arith.truncf %8 : vector<128x128xf32> to vector<128x128xbf16>
    %cst_8 = arith.constant dense<0.000000e+00> : vector<128x128xf32>
    %11 = tpu.matmul %9, %10, %cst_8 {dimension_numbers = #tpu.dot_dimension_numbers<[1], [0], [0], [1], [0, 0, 1, 1], [], []>} : vector<128x128xbf16>, vector<128x128xbf16>, vector<128x128xf32> -> vector<128x128xf32>
    %c0_9 = arith.constant 0 : index
    %c0_10 = arith.constant 0 : index
    %12 = vector.load %arg5[%c0_9, %c0_10] : memref<128x1xf32, #tpu.memory_space<vmem>>, vector<128x1xf32>
    %13 = vector.broadcast %12 : vector<128x1xf32> to vector<128x128xf32>
    %14 = arith.addf %11, %13 : vector<128x128xf32>
    %cst_11 = arith.constant 0.000000e+00 : f32
    %15 = vector.broadcast %cst_11 : f32 to vector<128x128xf32>
    %16 = arith.maximumf %14, %15 : vector<128x128xf32>
    %c0_12 = arith.constant 0 : index
    %c0_13 = arith.constant 0 : index
    %17 = vector.load %arg6[%c0_12, %c0_13] : memref<4x128xbf16, #tpu.memory_space<vmem>>, vector<4x128xbf16>
    %18 = arith.truncf %16 : vector<128x128xf32> to vector<128x128xbf16>
    %cst_14 = arith.constant dense<0.000000e+00> : vector<4x128xf32>
    %19 = tpu.matmul %17, %18, %cst_14 {dimension_numbers = #tpu.dot_dimension_numbers<[1], [0], [0], [1], [0, 0, 1, 1], [], []>} : vector<4x128xbf16>, vector<128x128xbf16>, vector<4x128xf32> -> vector<4x128xf32>
    %c0_15 = arith.constant 0 : index
    %c0_16 = arith.constant 0 : index
    %20 = vector.load %arg7[%c0_15, %c0_16] : memref<4x1xf32, #tpu.memory_space<vmem>>, vector<4x1xf32>
    %21 = vector.broadcast %20 : vector<4x1xf32> to vector<4x128xf32>
    %22 = arith.addf %19, %21 : vector<4x128xf32>
    %23 = vector.extract_strided_slice %0 {offsets = [0, 0], sizes = [4, 128], strides = [1, 1]} : vector<8x128xf32> to vector<4x128xf32>
    %24 = arith.addf %23, %22 : vector<4x128xf32>
    %c0_17 = arith.constant 0 : index
    %c0_18 = arith.constant 0 : index
    %25 = vector.load %arg8[%c0_17, %c0_18] : memref<4x128xf32, #tpu.memory_space<vmem>>, vector<4x128xf32>
    tpu.vector_store %arg8[%c0_17, %c0_18], %24 {strides = array<i32>} : memref<4x128xf32, #tpu.memory_space<vmem>>, vector<4x128xf32>,
    return
  }
  func.func @transform_0(%arg0: i32) -> (i32, i32) {
    %c0_i32 = arith.constant 0 : i32
    %c0_i32_0 = arith.constant 0 : i32
    return %c0_i32, %arg0 : i32, i32
  }
  func.func @transform_1(%arg0: i32) -> (i32, i32) {
    %c0_i32 = arith.constant 0 : i32
    %c0_i32_0 = arith.constant 0 : i32
    %c0_i32_1 = arith.constant 0 : i32
    return %c0_i32, %c0_i32_0 : i32, i32
  }
  func.func @transform_2(%arg0: i32) -> (i32, i32) {
    %c0_i32 = arith.constant 0 : i32
    %c0_i32_0 = arith.constant 0 : i32
    %c0_i32_1 = arith.constant 0 : i32
    return %c0_i32, %c0_i32_0 : i32, i32
  }
  func.func @transform_3(%arg0: i32) -> (i32, i32) {
    %c0_i32 = arith.constant 0 : i32
    %c0_i32_0 = arith.constant 0 : i32
    %c0_i32_1 = arith.constant 0 : i32
    return %c0_i32, %c0_i32_0 : i32, i32
  }
  func.func @transform_4(%arg0: i32) -> (i32, i32) {
    %c0_i32 = arith.constant 0 : i32
    %c0_i32_0 = arith.constant 0 : i32
    %c0_i32_1 = arith.constant 0 : i32
    return %c0_i32, %c0_i32_0 : i32, i32
  }
  func.func @transform_5(%arg0: i32) -> (i32, i32) {
    %c0_i32 = arith.constant 0 : i32
    %c0_i32_0 = arith.constant 0 : i32
    %c0_i32_1 = arith.constant 0 : i32
    return %c0_i32, %c0_i32_0 : i32, i32
  }
  func.func @transform_6(%arg0: i32) -> (i32, i32) {
    %c0_i32 = arith.constant 0 : i32
    %c0_i32_0 = arith.constant 0 : i32
    %c0_i32_1 = arith.constant 0 : i32
    return %c0_i32, %c0_i32_0 : i32, i32
  }
  func.func @transform_7(%arg0: i32) -> (i32, i32) {
    %c0_i32 = arith.constant 0 : i32
    %c0_i32_0 = arith.constant 0 : i32
    return %c0_i32, %arg0 : i32, i32
  }
}

</mosaic_0001>

<bundles_post_ra>
// kernel: tpu_custom_call.1
= control target key start
LH: loop header
LB: loop body
LE: loop exit
PB: predicated region body
PF: predicated region fallthrough
CT: control target
= control target key end

     0   :  { %vm207_vm0 = vcmask 1043456   ;;  %vm182_vm1 = vcmask 64512   ;;  %v851_v6 = vmov 0   ;;  %s1082_s0 = inlined_call_operand.vmem [shape: f32[8,128], index: 0, kind: input, shape index: {}]   ;;  %s1083_s1 = inlined_call_operand.vmem [shape: bf16[128,8], index: 1, kind: input, shape index: {}]   ;;  %s1084_s2 = inlined_call_operand.vmem [shape: f32[128,1], index: 2, kind: input, shape index: {}]   ;;  %s1085_s3 = inlined_call_operand.vmem [shape: bf16[128,128], index: 3, kind: input, shape index: {}]   ;;  %s1086_s4 = inlined_call_operand.vmem [shape: f32[128,1], index: 4, kind: input, shape index: {}]   ;;  %s1087_s5 = inlined_call_operand.vmem [shape: bf16[4,128], index: 5, kind: input, shape index: {}]   ;;  %s1088_s6 = inlined_call_operand.vmem [shape: f32[4,1], index: 6, kind: input, shape index: {}]   ;;  %s1089_s7 = inlined_call_operand.hbm [shape: f32[4,128], index: 7, kind: output, shape index: {}]  }
   0x1   :  { %v898_v0 = vld [vmem:[%s1082_s0] sm:$0xff]  ;;  %v812_v4 = vld [vmem:[%s1083_s1 + $0x8] sm:$0xff]   ;;  %v813_v5 = vld [vmem:[%s1083_s1 + $0x10] sm:$0xff]   ;;  %809 = vset.pattern.permute.xlu0 %v851_v6  ;;  %810 = vset.pattern.permute.xlu1 %v851_v6 }
   0x2   :  { %v29_v1 = vpack.c.bf16 %v898_v0, %v898_v0  ;;  %v811_v2 = vld [vmem:[%s1083_s1] sm:$0xff]   ;;  %v47_v8 = vld [vmem:[%s1084_s2 + $0x8] sm:$0xff]  ;;  %v48_v9 = vld [vmem:[%s1084_s2 + $0x10] sm:$0xff] }
   0x3   :  { %736 = vmatprep.mubr.msk.bf16.mxu0 %vm182_vm1, %v811_v2  ;;  %v46_v7 = vld [vmem:[%s1084_s2] sm:$0xff]  ;;  %74 = vperm.xlu1 %810, %v48_v9   ;;  %v814_v10 = vld [vmem:[%s1083_s1 + $0x18] sm:$0xff]   ;;  %v51_v14 = vld [vmem:[%s1084_s2 + $0x28] sm:$0xff] }
   0x4   :  { %804 = vmatprep.subr.msk.bf16.mxu0 %vm207_vm0, %v29_v1  ;;  %v209_v3 = vsel %vm207_vm0, %v29_v1, 0  ;;  %64 = vperm.xlu0 %809, %v46_v7   ;;  %v49_v11 = vld [vmem:[%s1084_s2 + $0x18] sm:$0xff]  ;;  %v815_v12 = vld [vmem:[%s1083_s1 + $0x20] sm:$0xff]   ;;  %v52_v15 = vld [vmem:[%s1084_s2 + $0x30] sm:$0xff] }
   0x5   :  { %735 = vmatpush3.bf16.msra.mxu0 %v209_v3  ;;  %v50_v13 = vld [vmem:[%s1084_s2 + $0x20] sm:$0xff]  ;;  %v816_v16 = vld [vmem:[%s1083_s1 + $0x28] sm:$0xff]   ;;  %v817_v17 = vld [vmem:[%s1083_s1 + $0x30] sm:$0xff]  }
   0x6   :  { %v54_v18 = vld [vmem:[%s1084_s2 + $0x40] sm:$0xff]  ;;  %v53_v19 = vld [vmem:[%s1084_s2 + $0x38] sm:$0xff]  ;;  %v55_v20 = vld [vmem:[%s1084_s2 + $0x48] sm:$0xff] }
   0x7   :  { %79 = vperm.xlu1 %810, %v49_v11   ;;  %v56_v21 = vld [vmem:[%s1084_s2 + $0x50] sm:$0xff] }
   0x8   :  { %737 = vmatmul.mubr.msk.bf16.vlgmr.msra.gmra.mrb[0].mxu0 %vm182_vm1, %v812_v4  ;;  %69 = vperm.xlu0 %809, %v47_v8  }
   0x9   :  { %740 = vmatprep.mubr.msk.bf16.mxu0 %vm182_vm1, %v813_v5 }
   0xb   :  { %89 = vperm.xlu1 %810, %v51_v14  }
   0xc   :  { %84 = vperm.xlu0 %809, %v50_v13  }
   0xf   :  { %99 = vperm.xlu1 %810, %v53_v19  }
  0x10   :  { %741 = vmatmul.mubr.msk.bf16.gmra.mrb[4].mxu0 %vm182_vm1, %v814_v10  ;;  %94 = vperm.xlu0 %809, %v52_v15  }
  0x11   :  { %744 = vmatprep.mubr.msk.bf16.mxu0 %vm182_vm1, %v815_v12 }
  0x14   :  { %104 = vperm.xlu0 %809, %v54_v18  }
  0x18   :  { %745 = vmatmul.mubr.msk.bf16.gmra.mrb[8].mxu0 %vm182_vm1, %v816_v16 }
  0x19   :  { %748 = vmatprep.mubr.msk.bf16.mxu0 %vm182_vm1, %v817_v17 }
  0x1a   :  { %12 = vsyncpa [#allocation3], 0  ;;  %109 = vperm.xlu1 %810, %v55_v20   ;;  %v818_v22 = vld [vmem:[%s1083_s1 + $0x38] sm:$0xff]   ;;  %114 = vperm.xlu0 %809, %v56_v21   ;;  %v58_v24 = vld [vmem:[%s1084_s2 + $0x60] sm:$0xff]  ;;  %vm853_vm2 = vmmov 0   ;;  %s854_s23 = smov [#allocation2]  }
  0x1b   :  { %v57_v23 = vld [vmem:[%s1084_s2 + $0x58] sm:$0xff]  ;;  %v59_v25 = vld [vmem:[%s1084_s2 + $0x68] sm:$0xff]  ;;  %v60_v26 = vld [vmem:[%s1084_s2 + $0x70] sm:$0xff]  ;;  %s668_s1 = sshll.u32 %s854_s23, 4  ;;  %s669_s1 = int_to_ptr.vmem [resolvable:$true] %s668_s1 }
  0x1c   :  { %v61_v27 = vld [vmem:[%s1084_s2 + $0x78] sm:$0xff]  ;;  %v348_v28 = vld [vmem:[%s1086_s4] sm:$0xff]  ;;  %v349_v29 = vld [vmem:[%s1086_s4 + $0x8] sm:$0xff]  ;;  %s827_s24 = scalar_lea.vmem %s669_s1, 64  ;;  %p832_p1 = scmp.lt.s32.totalorder %s669_s1, %s669_s1 }
  0x1d   :  { %v350_v30 = vld [vmem:[%s1086_s4 + $0x10] sm:$0xff]  ;;  %v351_v31 = vld [vmem:[%s1086_s4 + $0x18] sm:$0xff]  ;;  %v352_v32 = vld [vmem:[%s1086_s4 + $0x20] sm:$0xff]  ;;  %p828_p0 = scmp.ne.s32.totalorder %s669_s1, %s827_s24  ;;  %p833_p2 = scmp.lt.s32.totalorder %s827_s24, %s827_s24 }
  0x1e   :  { %119 = vperm.xlu1 %810, %v57_v23   ;;  %124 = vperm.xlu0 %809, %v58_v24   ;;  %v353_v33 = vld [vmem:[%s1086_s4 + $0x28] sm:$0xff]  ;;  %v354_v34 = vld [vmem:[%s1086_s4 + $0x30] sm:$0xff]  ;;  %v355_v35 = vld [vmem:[%s1086_s4 + $0x38] sm:$0xff] }
  0x1f   :  { %v356_v36 = vld [vmem:[%s1086_s4 + $0x40] sm:$0xff]  ;;  %v357_v37 = vld [vmem:[%s1086_s4 + $0x48] sm:$0xff]  ;;  %v358_v38 = vld [vmem:[%s1086_s4 + $0x50] sm:$0xff]  ;;  %p834_p3 = por %p833_p2, %p832_p1 }
  0x20   :  { %749 = vmatmul.mubr.msk.bf16.gmra.mrb[12].mxu0 %vm182_vm1, %v818_v22  ;;  %v359_v39 = vld [vmem:[%s1086_s4 + $0x58] sm:$0xff]  ;;  %v360_v40 = vld [vmem:[%s1086_s4 + $0x60] sm:$0xff]  ;;  %v361_v41 = vld [vmem:[%s1086_s4 + $0x68] sm:$0xff] }
  0x21   :  { %v362_v42 = vld [vmem:[%s1086_s4 + $0x70] sm:$0xff]  ;;  %v363_v43 = vld [vmem:[%s1086_s4 + $0x78] sm:$0xff]  ;;  %v614_v44 = vld [vmem:[%s1088_s6] sm:$0xf]  ;;  %p835_p4 = pnand %p834_p3, %p828_p0 }
  0x22   :  { %129 = vperm.xlu1 %810, %v59_v25   ;;  %134 = vperm.xlu0 %809, %v60_v26   ;;  %v819_v45 = vld [vmem:[%s1085_s3] sm:$0xff]  }
  0x23   :  { %768 = vmatprep.mubr.bf16.mxu1 %v819_v45 }
  0x26   :  { %139 = vperm.xlu1 %810, %v61_v27   ;;  %366 = vperm.xlu0 %809, %v348_v28  }
  0x2a   :  { %371 = vperm.xlu1 %810, %v349_v29   ;;  %376 = vperm.xlu0 %809, %v350_v30  }
  0x2e   :  { %381 = vperm.xlu1 %810, %v351_v31   ;;  %386 = vperm.xlu0 %809, %v352_v32  }
  0x32   :  { %391 = vperm.xlu1 %810, %v353_v33   ;;  %396 = vperm.xlu0 %809, %v354_v34  }
  0x36   :  { %401 = vperm.xlu1 %810, %v355_v35   ;;  %406 = vperm.xlu0 %809, %v356_v36  }
  0x3a   :  { %411 = vperm.xlu1 %810, %v357_v37   ;;  %416 = vperm.xlu0 %809, %v358_v38  }
  0x3e   :  { %421 = vperm.xlu1 %810, %v359_v39   ;;  %426 = vperm.xlu0 %809, %v360_v40  }
  0x42   :  { %431 = vperm.xlu1 %810, %v361_v41   ;;  %436 = vperm.xlu0 %809, %v362_v42  }
  0x46   :  { %441 = vperm.xlu1 %810, %v363_v43   ;;  %617 = vperm.xlu0 %809, %v614_v44  }
  0x82   :  { %v75_v47 = vpop.permute.xlu1 %74 }
  0x83   :  { %v65_v46 = vpop.permute.xlu0 %64 }
  0x86   :  { %v80_v49 = vpop.permute.xlu1 %79 }
  0x87   :  { %v70_v48 = vpop.permute.xlu0 %69 }
  0x8a   :  { %v90_v51 = vpop.permute.xlu1 %89 }
  0x8b   :  { %v85_v50 = vpop.permute.xlu0 %84 }
  0x8e   :  { %v100_v56 = vpop.permute.xlu1 %99 }
  0x8f   :  { %v95_v52 = vpop.permute.xlu0 %94 }
  0x93   :  { %v105_v1 = vpop.permute.xlu0 %104 }
  0x99   :  { %v110_v5 = vpop.permute.xlu1 %109  ;;  %v115_v14 = vpop.permute.xlu0 %114 }
  0x9d   :  { %v120_v18 = vpop.permute.xlu1 %119  ;;  %v125_v26 = vpop.permute.xlu0 %124 }
  0xa1   :  { %v130_v31 = vpop.permute.xlu1 %129  ;;  %v135_v38 = vpop.permute.xlu0 %134 }
  0xa5   :  { %v140_v43 = vpop.permute.xlu1 %139 }
  0xdb   :  { %v738_v53 = vpop.f32.mrb[0].mxu0 }
  0xdc   :  { %v254_v54 = vadd.f32 %v738_v53, %v75_v47  ;;  %v245_v55 = vpop.f32.mrb[1].mxu0 }
  0xdd   :  { %v246_v57 = vadd.f32 %v245_v55, %v65_v46  ;;  %v739_v58 = vpop.f32.mrb[2].mxu0  ;;  %v820_v55 = vld [vmem:[%s1085_s3 + $0x8] sm:$0xff]  }
  0xde   :  { %v257_v59 = vadd.f32 %v739_v58, %v80_v49  ;;  %v248_v60 = vpop.f32.mrb[3].mxu0  ;;  %v310_v62 = vmax.f32 %v254_v54, 0.0  ;;  %v823_v58 = vld [vmem:[%s1085_s3 + $0x20] sm:$0xff]  }
  0xdf   :  { %v249_v61 = vadd.f32 %v248_v60, %v70_v48  ;;  %v308_v2 = vmax.f32 %v246_v57, 0.0  ;;  %v822_v57 = vld [vmem:[%s1085_s3 + $0x18] sm:$0xff]   ;;  %v825_v60 = vld [vmem:[%s1085_s3 + $0x30] sm:$0xff]  }
  0xe0   :  { %v311_v63 = vmax.f32 %v257_v59, 0.0  ;;  %v824_v59 = vld [vmem:[%s1085_s3 + $0x28] sm:$0xff]  }
  0xe1   :  { %v309_v3 = vmax.f32 %v249_v61, 0.0  ;;  %v826_v61 = vld [vmem:[%s1085_s3 + $0x38] sm:$0xff]  }
  0xe2   :  { %v341_v4 = vpack.c.bf16 %v311_v63, %v310_v62  ;;  %v852_v62 = vmov 0.0   ;;  %v367_v63 = vpop.permute.xlu0 %366 }
  0xe3   :  { %v742_v6 = vpop.f32.mrb[4].mxu0  ;;  %v340_v7 = vpack.c.bf16 %v309_v3, %v308_v2  ;;  %784 = vmatprep.subr.bf16.mxu0 %v852_v62  ;;  %800 = vmatprep.mubr.msk.bf16.mxu0 %vm853_vm2, %v852_v62 }
  0xe4   :  { %v270_v8 = vadd.f32 %v742_v6, %v95_v52  ;;  %v261_v9 = vpop.f32.mrb[5].mxu0 }
  0xe5   :  { %v262_v10 = vadd.f32 %v261_v9, %v85_v50  ;;  %v743_v11 = vpop.f32.mrb[6].mxu0  ;;  %752 = vmatprep.subr.bf16.mxu1 %v340_v7 }
  0xe6   :  { %v273_v12 = vadd.f32 %v743_v11, %v100_v56  ;;  %v264_v13 = vpop.f32.mrb[7].mxu0  ;;  %753 = vmatpush3.bf16.msra.mxu1 %v340_v7  ;;  %v314_v16 = vmax.f32 %v270_v8, 0.0  ;;  %v821_v56 = vld [vmem:[%s1085_s3 + $0x10] sm:$0xff]   ;;  %v377_v2 = vpop.permute.xlu0 %376 }
  0xe7   :  { %v265_v15 = vadd.f32 %v264_v13, %v90_v51  ;;  %754 = vmatprep.subr.bf16.mxu1 %v341_v4  ;;  %v312_v19 = vmax.f32 %v262_v10, 0.0 }
  0xe8   :  { %v315_v17 = vmax.f32 %v273_v12, 0.0 }
  0xe9   :  { %v313_v20 = vmax.f32 %v265_v15, 0.0 }
  0xea   :  { %v343_v21 = vpack.c.bf16 %v315_v17, %v314_v16  ;;  %755 = vmatpush3.bf16.msra.mxu1 %v341_v4  ;;  %v387_v4 = vpop.permute.xlu0 %386 }
  0xeb   :  { %v342_v22 = vpack.c.bf16 %v313_v20, %v312_v19  ;;  %v746_v23 = vpop.f32.mrb[8].mxu0 }
  0xec   :  { %v286_v24 = vadd.f32 %v746_v23, %v115_v14  ;;  %v277_v25 = vpop.f32.mrb[9].mxu0 }
  0xed   :  { %v278_v27 = vadd.f32 %v277_v25, %v105_v1  ;;  %v747_v28 = vpop.f32.mrb[10].mxu0  ;;  %756 = vmatprep.subr.bf16.mxu1 %v342_v22  ;;  %v372_v1 = vpop.permute.xlu1 %371 }
  0xee   :  { %v289_v29 = vadd.f32 %v747_v28, %v120_v18  ;;  %v280_v30 = vpop.f32.mrb[11].mxu0  ;;  %757 = vmatpush3.bf16.msra.mxu1 %v342_v22  ;;  %v318_v33 = vmax.f32 %v286_v24, 0.0  ;;  %v397_v6 = vpop.permute.xlu0 %396 }
  0xef   :  { %v281_v32 = vadd.f32 %v280_v30, %v110_v5  ;;  %758 = vmatprep.subr.bf16.mxu1 %v343_v21  ;;  %v316_v35 = vmax.f32 %v278_v27, 0.0 }
  0xf0   :  { %v319_v34 = vmax.f32 %v289_v29, 0.0 }
  0xf1   :  { %v317_v36 = vmax.f32 %v281_v32, 0.0  ;;  %v382_v3 = vpop.permute.xlu1 %381 }
  0xf2   :  { %v345_v37 = vpack.c.bf16 %v319_v34, %v318_v33  ;;  %759 = vmatpush3.bf16.msra.mxu1 %v343_v21  ;;  %v407_v18 = vpop.permute.xlu0 %406 }
  0xf3   :  { %v344_v39 = vpack.c.bf16 %v317_v36, %v316_v35  ;;  %v750_v40 = vpop.f32.mrb[12].mxu0 }
  0xf4   :  { %v302_v41 = vadd.f32 %v750_v40, %v135_v38  ;;  %v293_v42 = vpop.f32.mrb[13].mxu0 }
  0xf5   :  { %v294_v44 = vadd.f32 %v293_v42, %v125_v26  ;;  %v751_v45 = vpop.f32.mrb[14].mxu0  ;;  %760 = vmatprep.subr.bf16.mxu1 %v344_v39  ;;  %v392_v5 = vpop.permute.xlu1 %391 }
  0xf6   :  { %v305_v46 = vadd.f32 %v751_v45, %v140_v43  ;;  %v296_v47 = vpop.f32.mrb[15].mxu0  ;;  %761 = vmatpush3.bf16.msra.mxu1 %v344_v39  ;;  %v322_v49 = vmax.f32 %v302_v41, 0.0 }
  0xf7   :  { %v297_v48 = vadd.f32 %v296_v47, %v130_v31  ;;  %762 = vmatprep.subr.bf16.mxu1 %v345_v37  ;;  %v320_v51 = vmax.f32 %v294_v44, 0.0  ;;  %v417_v31 = vpop.permute.xlu0 %416 }
  0xf8   :  { %v323_v50 = vmax.f32 %v305_v46, 0.0 }
  0xf9   :  { %v321_v52 = vmax.f32 %v297_v48, 0.0  ;;  %v402_v10 = vpop.permute.xlu1 %401 }
  0xfa   :  { %v347_v53 = vpack.c.bf16 %v323_v50, %v322_v49  ;;  %763 = vmatpush3.bf16.msra.mxu1 %v345_v37 }
  0xfb   :  { %v346_v54 = vpack.c.bf16 %v321_v52, %v320_v51  ;;  %v427_v43 = vpop.permute.xlu0 %426 }
  0xfd   :  { %764 = vmatprep.subr.bf16.mxu1 %v346_v54  ;;  %v412_v22 = vpop.permute.xlu1 %411 }
  0xfe   :  { %765 = vmatpush3.bf16.msra.mxu1 %v346_v54 }
  0xff   :  { %766 = vmatprep.subr.bf16.mxu1 %v347_v53 }
 0x101   :  { %v422_v35 = vpop.permute.xlu1 %421 }
 0x102   :  { %767 = vmatpush3.bf16.msra.mxu1 %v347_v53 }
 0x105   :  { %769 = vmatmul.mubr.bf16.vlgmr.msra.gmra.mrb[0].mxu1 %v820_v55  ;;  %v432_v48 = vpop.permute.xlu1 %431  ;;  %v437_v55 = vpop.permute.xlu0 %436 }
 0x106   :  { %772 = vmatprep.mubr.bf16.mxu1 %v821_v56 }
 0x10d   :  { %773 = vmatmul.mubr.bf16.gmra.mrb[4].mxu1 %v822_v57 }
 0x10e   :  { %776 = vmatprep.mubr.bf16.mxu1 %v823_v58 }
 0x115   :  { %777 = vmatmul.mubr.bf16.gmra.mrb[8].mxu1 %v824_v59 }
 0x116   :  { %780 = vmatprep.mubr.bf16.mxu1 %v825_v60  ;;  %v442_v60 = vpop.permute.xlu1 %441 }
 0x11d   :  { %781 = vmatmul.mubr.bf16.gmra.mrb[12].mxu1 %v826_v61 }
 0x1d8   :  { %v770_v7 = vpop.f32.mrb[0].mxu1 }
 0x1d9   :  { %v535_v8 = vadd.f32 %v770_v7, %v377_v2  ;;  %v526_v9 = vpop.f32.mrb[1].mxu1 }
 0x1da   :  { %v527_v11 = vadd.f32 %v526_v9, %v367_v63  ;;  %v771_v12 = vpop.f32.mrb[2].mxu1 }
 0x1db   :  { %v538_v13 = vadd.f32 %v771_v12, %v382_v3  ;;  %v529_v14 = vpop.f32.mrb[3].mxu1  ;;  %v591_v16 = vmax.f32 %v535_v8, 0.0 }
 0x1dc   :  { %v530_v15 = vadd.f32 %v529_v14, %v372_v1  ;;  %v589_v19 = vmax.f32 %v527_v11, 0.0  ;;  %v618_v11 = vpop.permute.xlu0 %617 }
 0x1dd   :  { %v592_v17 = vmax.f32 %v538_v13, 0.0 }
 0x1de   :  { %v590_v20 = vmax.f32 %v530_v15, 0.0 }
 0x1df   :  { %v607_v21 = vpack.c.bf16 %v592_v17, %v591_v16 }
 0x1e0   :  { %v606_v23 = vpack.c.bf16 %v590_v20, %v589_v19  ;;  %v774_v24 = vpop.f32.mrb[4].mxu1 }
 0x1e1   :  { %v551_v25 = vadd.f32 %v774_v24, %v397_v6  ;;  %v542_v26 = vpop.f32.mrb[5].mxu1 }
 0x1e2   :  { %v543_v27 = vadd.f32 %v542_v26, %v387_v4  ;;  %v775_v28 = vpop.f32.mrb[6].mxu1  ;;  %785 = vmatpush3.bf16.msra.mxu0 %v606_v23 }
 0x1e3   :  { %v554_v29 = vadd.f32 %v775_v28, %v402_v10  ;;  %v545_v30 = vpop.f32.mrb[7].mxu1  ;;  %786 = vmatprep.subr.bf16.mxu0 %v852_v62  ;;  %v595_v33 = vmax.f32 %v551_v25, 0.0  ;;  %v605_v10 = vld [vmem:[%s1087_s5] sm:$0x3] }
 0x1e4   :  { %v546_v32 = vadd.f32 %v545_v30, %v392_v5  ;;  %v593_v36 = vmax.f32 %v543_v27, 0.0 }
 0x1e5   :  { %v596_v34 = vmax.f32 %v554_v29, 0.0 }
 0x1e6   :  { %v594_v37 = vmax.f32 %v546_v32, 0.0  ;;  %787 = vmatpush3.bf16.msra.mxu0 %v607_v21 }
 0x1e7   :  { %v609_v38 = vpack.c.bf16 %v596_v34, %v595_v33  ;;  %788 = vmatprep.subr.bf16.mxu0 %v852_v62 }
 0x1e8   :  { %v608_v39 = vpack.c.bf16 %v594_v37, %v593_v36  ;;  %v778_v40 = vpop.f32.mrb[8].mxu1 }
 0x1e9   :  { %v567_v41 = vadd.f32 %v778_v40, %v417_v31  ;;  %v558_v42 = vpop.f32.mrb[9].mxu1 }
 0x1ea   :  { %v559_v44 = vadd.f32 %v558_v42, %v407_v18  ;;  %v779_v45 = vpop.f32.mrb[10].mxu1  ;;  %789 = vmatpush3.bf16.msra.mxu0 %v608_v39 }
 0x1eb   :  { %v570_v46 = vadd.f32 %v779_v45, %v422_v35  ;;  %v561_v47 = vpop.f32.mrb[11].mxu1  ;;  %790 = vmatprep.subr.bf16.mxu0 %v852_v62  ;;  %v599_v50 = vmax.f32 %v567_v41, 0.0 }
 0x1ec   :  { %v562_v49 = vadd.f32 %v561_v47, %v412_v22  ;;  %v597_v52 = vmax.f32 %v559_v44, 0.0 }
 0x1ed   :  { %v600_v51 = vmax.f32 %v570_v46, 0.0 }
 0x1ee   :  { %v598_v53 = vmax.f32 %v562_v49, 0.0  ;;  %791 = vmatpush3.bf16.msra.mxu0 %v609_v38 }
 0x1ef   :  { %v611_v54 = vpack.c.bf16 %v600_v51, %v599_v50  ;;  %792 = vmatprep.subr.bf16.mxu0 %v852_v62 }
 0x1f0   :  { %v610_v56 = vpack.c.bf16 %v598_v53, %v597_v52  ;;  %v782_v57 = vpop.f32.mrb[12].mxu1 }
 0x1f1   :  { %v583_v58 = vadd.f32 %v782_v57, %v437_v55  ;;  %v574_v59 = vpop.f32.mrb[13].mxu1 }
 0x1f2   :  { %v575_v61 = vadd.f32 %v574_v59, %v427_v43  ;;  %v783_v63 = vpop.f32.mrb[14].mxu1  ;;  %793 = vmatpush3.bf16.msra.mxu0 %v610_v56 }
 0x1f3   :  { %v586_v1 = vadd.f32 %v783_v63, %v442_v60  ;;  %v577_v2 = vpop.f32.mrb[15].mxu1  ;;  %794 = vmatprep.subr.bf16.mxu0 %v852_v62  ;;  %v603_v4 = vmax.f32 %v583_v58, 0.0 }
 0x1f4   :  { %v578_v3 = vadd.f32 %v577_v2, %v432_v48  ;;  %v601_v6 = vmax.f32 %v575_v61, 0.0 }
 0x1f5   :  { %v604_v5 = vmax.f32 %v586_v1, 0.0 }
 0x1f6   :  { %v602_v7 = vmax.f32 %v578_v3, 0.0  ;;  %795 = vmatpush3.bf16.msra.mxu0 %v611_v54 }
 0x1f7   :  { %v613_v8 = vpack.c.bf16 %v604_v5, %v603_v4  ;;  %796 = vmatprep.subr.bf16.mxu0 %v852_v62 }
 0x1f8   :  { %v612_v9 = vpack.c.bf16 %v602_v7, %v601_v6 }
 0x1fa   :  { %797 = vmatpush3.bf16.msra.mxu0 %v612_v9 }
 0x1fb   :  { %798 = vmatprep.subr.bf16.mxu0 %v852_v62 }
 0x1fe   :  { %799 = vmatpush3.bf16.msra.mxu0 %v613_v8 }
 0x201   :  { %801 = vmatmul.mubr.bf16.vlgmr.msra.gmra.mrb[16].mxu0 %v605_v10 }
 0x2d4   :  { %v654_v12 = vpop.f32.mrb[16].mxu0 }
 0x2d5   :  { %v655_v13 = vadd.f32 %v654_v12, %v618_v11  ;;  %v802_v14 = vpop.f32.mrb[17].mxu0 }
 0x2d6   :  { %v657_v15 = vpop.f32.mrb[18].mxu0 }
 0x2d7   :  { %v803_v16 = vpop.f32.mrb[19].mxu0  ;;  %v660_v17 = vadd.f32 %v655_v13, %v898_v0 }
 0x2d9   :  { %661 = vst [vmem:[#allocation2] sm:$0xf] %v660_v17 }
 0x2da   :  { %838 = shalt.err (!%p835_p4)
}
 0x2db   :  { %s839_s26 = scalar_lea.hbm %s1089_s7, 64 }
 0x2dc   :  { %p840_p5 = scmp.ne.s32.totalorder %s1089_s7, %s839_s26  ;;  %p843_p6 = scmp.lt.u32.totalorder %s839_s26, %s1089_s7 }
 0x2de   :  { %p845_p7 = pnand %p843_p6, %p840_p5 }
 0x2e0   :  { %848 = shalt.err (!%p845_p7)
}
 0x2e1   :  { %671 = dma.vmem_to_hbm [thread:$0]  %s669_s1, 64, %s1089_s7, [#allocation3]  }
 0x2e2   :  { %849 = dma.done.wait [#allocation3], 64  }
 0x2e3   :  { %850 = vsyncadd [#allocation3], 4294967232 }
 0x2e4   :  { %675 = vsyncpa [#allocation3], 1 }

</bundles_post_ra>
